<compile_context>
chip_gen: v7x
topology: tpu7x:2x2x1
jax: 0.10.0
libtpu: 0.0.40
codegen_flags: <defaults>
</compile_context>

<pallas_src>
import functools

import jax
import jax.numpy as jnp
from jax.experimental import pallas as pl
from jax.experimental.pallas import tpu as pltpu


_MAX_BLOCK_ROWS = 2048
_MIN_PALLAS_ROWS = 64          # below this a kernel launch is pure overhead
_MIN_TILES = 8                 # aim for >= this many grid steps (megacore + pipelining)


@functools.lru_cache(maxsize=1)
def _vmem_budgets():
    """(pipeline_input_budget, scoped_vmem_limit) in bytes, generation aware."""
    cap = 64 * 1024 * 1024                      # conservative default: v7x per-core VMEM
    try:
        cap = int(pltpu.get_tpu_info().vmem_capacity_bytes)
    except Exception:
        pass
    pipe = max(cap // 4, 8 * 1024 * 1024)       # double-buffered input tiles
    limit = max(min((3 * cap) // 4, cap - 8 * 1024 * 1024), 32 * 1024 * 1024)
    return pipe, limit


def _round8_down(n):
    return max(8, (n // 8) * 8)


def _choose_block_rows(num_rows, num_classes, pipe_budget, itembytes,
                       min_tiles=_MIN_TILES):
    """Largest multiple-of-8 row tile that (a) keeps the double-buffered input DMA
    inside the pipeline budget and (b) still yields >= min_tiles grid steps."""
    per_row = 2 * num_classes * max(itembytes, 1)        # x2: double buffering
    budget_rows = max(pipe_budget // per_row, 8)
    want_rows = -(-num_rows // max(min_tiles, 1))        # cdiv
    return _round8_down(min(budget_rows, _MAX_BLOCK_ROWS, max(want_rows, 8)))


def _largest_mult8_divisor_le(n, cap):
    best, d, top = None, 8, min(n, cap)
    while d <= top:
        if n % d == 0:
            best = d
        d += 8
    return best


def _repeat_rows(target, num_rows):
    """SoftTargetCrossEntropy row-repeat semantics, materialized (cold path)."""
    t_rows = target.shape[0]
    reps = num_rows // t_rows
    out = jnp.tile(target, (reps, 1))
    if reps * t_rows < num_rows:
        out = jnp.concatenate([out, target[:num_rows - reps * t_rows]], axis=0)
    return out


def _plain_stce(x, target):
    logp = jax.nn.log_softmax(x.astype(jnp.float32), axis=-1)
    return jnp.mean(jnp.sum(-target.astype(jnp.float32) * logp, axis=-1))


# ----------------------------------------------------------------------------
# Generic row-streaming kernel: (M, C) logits vs (M or T, C) soft targets.
# ----------------------------------------------------------------------------
def _make_stce_kernel(num_rows, block_rows, mask_tail):
    def kernel(x_ref, t_ref, out_ref):
        x = x_ref[...].astype(jnp.float32)                        # (bm, C)
        t = t_ref[...].astype(jnp.float32)                        # (bm, C)
        m = jnp.max(x, axis=-1, keepdims=True)
        lse = jnp.log(jnp.sum(jnp.exp(x - m), axis=-1, keepdims=True)) + m
        t_sum = jnp.sum(t, axis=-1, keepdims=True)
        tx = jnp.sum(t * x, axis=-1, keepdims=True)
        row_loss = lse * t_sum - tx              # == sum_c(-t * log_softmax(x))
        if mask_tail:
            # Only the per-row vector needs masking: every reduction above is
            # per-row, so garbage in padded rows cannot reach valid rows.
            i = pl.program_id(0)
            rows = jax.lax.broadcasted_iota(jnp.int32, (block_rows, 1), 0) + i * block_rows
            row_loss = jnp.where(rows < num_rows, row_loss, 0.0)
        out_ref[...] = jnp.broadcast_to(jnp.sum(row_loss), out_ref.shape)
    return kernel


def soft_target_cross_entropy(x, target, *, block_rows=None):
    """SoftTargetCrossEntropy.forward: mean over rows of sum(-t * log_softmax(x), -1)."""
    M, C = x.shape
    T = target.shape[0]
    pipe, limit = _vmem_budgets()
    itembytes = jnp.dtype(x.dtype).itemsize + jnp.dtype(target.dtype).itemsize

    # Tiny heads (e.g. the cls token): a kernel launch is pure overhead.
    if M < _MIN_PALLAS_ROWS and block_rows is None:
        tt = target if T == M else _repeat_rows(target, M)
        return _plain_stce(x, tt)

    if block_rows is None:
        block_rows = _choose_block_rows(M, C, pipe, itembytes)

    # Row-repeat semantics: stream the small target via a modulo index_map
    # when block boundaries can align with its row count (no HBM repeat copy).
    modulo_target = False
    t_tiles = 1
    if T != M:
        if M % T == 0:
            d = _largest_mult8_divisor_le(T, block_rows)
            if d is not None:
                block_rows = d
                t_tiles = T // block_rows
                modulo_target = True
        if not modulo_target:
            # TODO(synk): ragged / misaligned repeat path still materializes.
            target = _repeat_rows(target, M)
            T = M

    # Large-C guard: if even this tile cannot fit the scoped VMEM limit,
    # fall back to plain JAX rather than failing to compile.
    if 2 * block_rows * C * itembytes > limit - (2 << 20):
        # TODO(synk): class-dim-tiled (online-softmax) kernel for very large C.
        tt = target if target.shape[0] == M else _repeat_rows(target, M)
        return _plain_stce(x, tt)

    num_tiles = pl.cdiv(M, block_rows)
    mask_tail = (M % block_rows) != 0
    if modulo_target:
        t_map = lambda i: (i % t_tiles, 0)
    else:
        t_map = lambda i: (i, 0)

    partial = pl.pallas_call(
        _make_stce_kernel(M, block_rows, mask_tail),
        out_shape=jax.ShapeDtypeStruct((num_tiles, 8, 128), jnp.float32),
        grid_spec=pltpu.PrefetchScalarGridSpec(
            num_scalar_prefetch=0,
            grid=(num_tiles,),
            in_specs=[
                pl.BlockSpec((block_rows, C), lambda i: (i, 0)),
                pl.BlockSpec((block_rows, C), t_map),
            ],
            out_specs=pl.BlockSpec((1, 8, 128), lambda i: (i, 0, 0)),
        ),
        compiler_params=pltpu.CompilerParams(
            dimension_semantics=("parallel",),
            vmem_limit_bytes=limit),
    )(x, target)

    return jnp.sum(partial[:, 0, 0]) / M


# ----------------------------------------------------------------------------
# 2-D target path: one (1, C) target row shared by all tokens of a sample.
# ----------------------------------------------------------------------------
def _make_stce_bcast_kernel(num_tokens, block_n, mask_tail):
    def kernel(x_ref, t_ref, out_ref):
        x = x_ref[0].astype(jnp.float32)                 # (block_n, C)
        t = t_ref[0].astype(jnp.float32)                 # (1, C)
        m = jnp.max(x, axis=-1, keepdims=True)
        lse = jnp.log(jnp.sum(jnp.exp(x - m), axis=-1, keepdims=True)) + m
        t_sum = jnp.sum(t)                               # scalar
        tx = jnp.sum(t * x, axis=-1, keepdims=True)      # (block_n, 1)
        row_loss = lse * t_sum - tx
        if mask_tail:
            j = pl.program_id(1)
            rows = jax.lax.broadcasted_iota(jnp.int32, (block_n, 1), 0) + j * block_n
            row_loss = jnp.where(rows < num_tokens, row_loss, 0.0)
        out_ref[...] = jnp.broadcast_to(jnp.sum(row_loss), out_ref.shape)
    return kernel


def soft_target_ce_token_broadcast(aux_logits, target):
    """mean over B*N token rows of sum(-target[b] * log_softmax(aux[b, n]), -1),
    broadcasting the (B, C) target through the BlockSpec (no (B*N, C) copy)."""
    B, N, C = aux_logits.shape
    pipe, limit = _vmem_budgets()
    isz_x = jnp.dtype(aux_logits.dtype).itemsize
    isz_t = jnp.dtype(target.dtype).itemsize

    if B * N < _MIN_PALLAS_ROWS:
        logp = jax.nn.log_softmax(aux_logits.astype(jnp.float32), axis=-1)
        return jnp.mean(jnp.sum(-target.astype(jnp.float32)[:, None, :] * logp, axis=-1))

    # The (1, C) target block stays resident across a sample's token tiles, so
    # only the logits tile counts against the streaming budget.
    block_n = _choose_block_rows(N, C, pipe, isz_x,
                                 min_tiles=max(1, -(-_MIN_TILES // B)))
    if 2 * block_n * C * isz_x + 2 * C * isz_t > limit - (2 << 20):
        # TODO(synk): class-dim-tiled (online-softmax) variant for very large C.
        logp = jax.nn.log_softmax(aux_logits.astype(jnp.float32), axis=-1)
        return jnp.mean(jnp.sum(-target.astype(jnp.float32)[:, None, :] * logp, axis=-1))

    n_tiles = pl.cdiv(N, block_n)
    mask_tail = (N % block_n) != 0
    target3 = target[:, None, :]                 # (B, 1, C) view-style reshape

    partial = pl.pallas_call(
        _make_stce_bcast_kernel(N, block_n, mask_tail),
        out_shape=jax.ShapeDtypeStruct((B, n_tiles, 8, 128), jnp.float32),
        grid_spec=pltpu.PrefetchScalarGridSpec(
            num_scalar_prefetch=0,
            grid=(B, n_tiles),
            in_specs=[
                pl.BlockSpec((1, block_n, C), lambda b, j: (b, j, 0)),
                pl.BlockSpec((1, 1, C), lambda b, j: (b, 0, 0)),
            ],
            out_specs=pl.BlockSpec((1, 1, 8, 128), lambda b, j: (b, j, 0, 0)),
        ),
        compiler_params=pltpu.CompilerParams(
            dimension_semantics=("parallel", "parallel"),
            vmem_limit_bytes=limit),
    )(aux_logits, target3)

    return jnp.sum(partial[:, :, 0, 0]) / (B * N)


# ----------------------------------------------------------------------------
# 3-D target path: read the (B, C, N+2) token-label slab directly and
# transpose it in VMEM (no HBM transpose copy).
# ----------------------------------------------------------------------------
def _stce_token_slab_kernel(x_ref, t_ref, out_ref):
    x = x_ref[0].astype(jnp.float32)                     # (N, C) per-sample logits
    slab = t_ref[0].astype(jnp.float32)                  # (C, N+2) token-label slab
    t = jnp.transpose(slab[:, 2:])                       # (N, C) -- in-kernel XLU transpose
    m = jnp.max(x, axis=-1, keepdims=True)
    lse = jnp.log(jnp.sum(jnp.exp(x - m), axis=-1, keepdims=True)) + m
    t_sum = jnp.sum(t, axis=-1, keepdims=True)
    tx = jnp.sum(t * x, axis=-1, keepdims=True)
    out_ref[...] = jnp.broadcast_to(jnp.sum(lse * t_sum - tx), out_ref.shape)


def soft_target_ce_token_slab(aux_logits, target):
    """mean over B*N token rows of the per-token CE against target[b, :, 2 + n]."""
    B, N, C = aux_logits.shape
    pipe, limit = _vmem_budgets()
    isz_x = jnp.dtype(aux_logits.dtype).itemsize
    isz_t = jnp.dtype(target.dtype).itemsize
    foot = 2 * N * C * isz_x + 2 * C * (N + 2) * isz_t   # double-buffered per-sample tiles

    if B * N < _MIN_PALLAS_ROWS or foot > pipe:
        # TODO(synk): token/class-tiled slab kernel for very large per-sample
        # footprints; fall back to an XLA transpose + the row-streaming kernel.
        t_aux = jnp.transpose(target[:, :, 2:], (0, 2, 1)).reshape(-1, C)
        return soft_target_cross_entropy(aux_logits.reshape(-1, C), t_aux)

    partial = pl.pallas_call(
        _stce_token_slab_kernel,
        out_shape=jax.ShapeDtypeStruct((B, 8, 128), jnp.float32),
        grid_spec=pltpu.PrefetchScalarGridSpec(
            num_scalar_prefetch=0,
            grid=(B,),
            in_specs=[
                pl.BlockSpec((1, N, C), lambda b: (b, 0, 0)),
                pl.BlockSpec((1, C, N + 2), lambda b: (b, 0, 0)),
            ],
            out_specs=pl.BlockSpec((1, 8, 128), lambda b: (b, 0, 0)),
        ),
        compiler_params=pltpu.CompilerParams(
            dimension_semantics=("parallel",),
            vmem_limit_bytes=limit),
    )(aux_logits, target)

    return jnp.sum(partial[:, 0, 0]) / (B * N)


# ----------------------------------------------------------------------------
# TokenLabelCrossEntropy.forward
# ----------------------------------------------------------------------------
def token_label_cross_entropy(x, target, *, dense_weight=1.0, cls_weight=1.0,
                              ground_truth=False):
    """x = (output (B, C), aux_output (B, N, C), bb = (bbx1, bby1, bbx2, bby2)).
    target: (B, C) soft labels OR (B, C, N+2) token-label tensor."""
    output, aux_output, bb = x
    bbx1, bby1, bbx2, bby2 = bb
    B, N, C = aux_output.shape

    if target.ndim == 2:
        target_cls = target
        use_slab = False
    else:
        target_cls = target[:, :, 1]
        if ground_truth:
            gt = target[:, :, 0]
            same = (jnp.argmax(gt, axis=-1) == jnp.argmax(target_cls, axis=-1))
            ratio = (0.9 - 0.4 * same.astype(target_cls.dtype))[:, None]
            target_cls = target_cls * ratio + gt * (1.0 - ratio)
        use_slab = True

    lam = 1.0 - (bbx2 - bbx1) * (bby2 - bby1) / N
    mixed = lam * target_cls + (1.0 - lam) * jnp.flip(target_cls, axis=0)
    target_cls = jnp.where(lam < 1.0, mixed, target_cls)

    loss_cls = soft_target_cross_entropy(output, target_cls)
    if use_slab:
        loss_aux = soft_target_ce_token_slab(aux_output, target)
    else:
        loss_aux = soft_target_ce_token_broadcast(aux_output, target)
    return cls_weight * loss_cls + dense_weight * loss_aux


if __name__ == "__main__":
    key = jax.random.PRNGKey(0)
    B, N, C = 8, 32, 128   # B*N = 256 token rows, lane-aligned classes

    k1, k2, k3, k4, k5, k6 = jax.random.split(key, 6)
    output = jax.random.normal(k1, (B, C), dtype=jnp.float32)
    aux_output = jax.random.normal(k2, (B, N, C), dtype=jnp.float32)
    target = jax.nn.softmax(
        jax.random.normal(k3, (B, C, N + 2), dtype=jnp.float32), axis=1)
    # cutmix box -> lam = 1 - 16/32 = 0.5 (< 1, exercises the flip-mix path)
    bb = (jnp.float32(1.0), jnp.float32(1.0), jnp.float32(5.0), jnp.float32(5.0))

    loss = jax.block_until_ready(
        token_label_cross_entropy((output, aux_output, bb), target))

    # --- pure-JAX reference checks -------------------------------------------
    def ref_stce(xx, tt):
        return jnp.mean(jnp.sum(-tt * jax.nn.log_softmax(xx, axis=-1), axis=-1))

    lam = 1.0 - (bb[2] - bb[0]) * (bb[3] - bb[1]) / N

    # 1) full module, 3-D token-label target (slab kernel, in-kernel transpose)
    t_cls = target[:, :, 1]
    t_cls = lam * t_cls + (1.0 - lam) * jnp.flip(t_cls, axis=0)
    t_aux = jnp.transpose(target[:, :, 2:], (0, 2, 1)).reshape(-1, C)
    ref = ref_stce(output, t_cls) + ref_stce(aux_output.reshape(-1, C), t_aux)
    assert jnp.allclose(loss, ref, rtol=1e-4, atol=1e-4), (loss, ref)

    # 2) multi-tile + tail-masked path of the row-streaming kernel
    xm = jax.random.normal(k4, (300, C), dtype=jnp.float32)
    tm = jax.nn.softmax(jax.random.normal(k5, (300, C), dtype=jnp.float32), axis=-1)
    got = jax.block_until_ready(soft_target_cross_entropy(xm, tm, block_rows=128))
    assert jnp.allclose(got, ref_stce(xm, tm), rtol=1e-4, atol=1e-4), (got,)

    # 3) 2-D target path (broadcast-target kernel, no (B*N, C) target copy)
    t2d = jax.nn.softmax(jax.random.normal(k6, (B, C), dtype=jnp.float32), axis=-1)
    loss2 = jax.block_until_ready(
        token_label_cross_entropy((output, aux_output, bb), t2d))
    t2d_mixed = lam * t2d + (1.0 - lam) * jnp.flip(t2d, axis=0)
    t2d_aux = jnp.broadcast_to(t2d[:, None, :], (B, N, C)).reshape(-1, C)
    ref2 = ref_stce(output, t2d_mixed) + ref_stce(aux_output.reshape(-1, C), t2d_aux)
    assert jnp.allclose(loss2, ref2, rtol=1e-4, atol=1e-4), (loss2, ref2)

    # 4) exact-repeat semantics streamed via a modulo index_map (no HBM copy)
    xr = jax.random.normal(k4, (192, C), dtype=jnp.float32)
    tr = jax.nn.softmax(jax.random.normal(k5, (64, C), dtype=jnp.float32), axis=-1)
    got_r = jax.block_until_ready(soft_target_cross_entropy(xr, tr))
    ref_r = ref_stce(xr, jnp.tile(tr, (3, 1)))
    assert jnp.allclose(got_r, ref_r, rtol=1e-4, atol=1e-4), (got_r, ref_r)

    # 5) bf16 inputs on the slab path (kernels upcast to f32 internally)
    loss_bf16 = jax.block_until_ready(
        token_label_cross_entropy(
            (output.astype(jnp.bfloat16), aux_output.astype(jnp.bfloat16), bb),
            target.astype(jnp.bfloat16)))
    assert jnp.allclose(loss_bf16, ref, rtol=5e-2, atol=5e-2), (loss_bf16, ref)

    print("KERNEL_OK")
</pallas_src>

<mosaic_0001>
module attributes {stable_mosaic.version = 11 : i64} {
  func.func @_stce_token_slab_kernel(%arg0: i32, %arg1: memref<1x32x128xf32, #tpu.memory_space<vmem>>, %arg2: memref<1x128x34xf32, #tpu.memory_space<vmem>>, %arg3: memref<1x8x128xf32, #tpu.memory_space<vmem>>) attributes {dimension_semantics = [#tpu.dimension_semantics<parallel>], iteration_bounds = array<i64: 8>, scalar_prefetch = 0 : i64, scratch_operands = 0 : i64, tpu.core_type = #tpu.core_type<tc>, window_params = [{transform_indices = @transform_0, window_bounds = array<i64: 1, 32, 128>}, {transform_indices = @transform_1, window_bounds = array<i64: 1, 128, 34>}, {transform_indices = @transform_2, window_bounds = array<i64: 1, 8, 128>}]} {
    %c0 = arith.constant 0 : index
    %c0_0 = arith.constant 0 : index
    %c0_1 = arith.constant 0 : index
    %0 = vector.load %arg1[%c0, %c0_0, %c0_1] : memref<1x32x128xf32, #tpu.memory_space<vmem>>, vector<1x32x128xf32>
    %1 = vector.shape_cast %0 : vector<1x32x128xf32> to vector<32x128xf32>
    %c0_2 = arith.constant 0 : index
    %c0_3 = arith.constant 0 : index
    %c0_4 = arith.constant 0 : index
    %2 = vector.load %arg2[%c0_2, %c0_3, %c0_4] : memref<1x128x34xf32, #tpu.memory_space<vmem>>, vector<1x128x34xf32>
    %3 = vector.shape_cast %2 : vector<1x128x34xf32> to vector<128x34xf32>
    %4 = vector.extract_strided_slice %3 {offsets = [0, 2], sizes = [128, 32], strides = [1, 1]} : vector<128x34xf32> to vector<128x32xf32>
    %5 = tpu.transpose %4, [1, 0] : vector<128x32xf32> -> vector<32x128xf32>
    %cst = arith.constant dense<0xFF800000> : vector<32xf32>
    %6 = vector.multi_reduction <maximumf>, %1, %cst [1] : vector<32x128xf32> to vector<32xf32>
    %7 = vector.shape_cast %6 : vector<32xf32> to vector<32x1xf32>
    %8 = vector.broadcast %7 : vector<32x1xf32> to vector<32x128xf32>
    %9 = arith.subf %1, %8 : vector<32x128xf32>
    %10 = math.exp %9 : vector<32x128xf32>
    %cst_5 = arith.constant dense<0.000000e+00> : vector<32xf32>
    %11 = vector.multi_reduction <add>, %10, %cst_5 [1] : vector<32x128xf32> to vector<32xf32>
    %12 = vector.shape_cast %11 : vector<32xf32> to vector<32x1xf32>
    %13 = math.log %12 : vector<32x1xf32>
    %14 = arith.addf %13, %7 : vector<32x1xf32>
    %cst_6 = arith.constant dense<0.000000e+00> : vector<32xf32>
    %15 = vector.multi_reduction <add>, %5, %cst_6 [1] : vector<32x128xf32> to vector<32xf32>
    %16 = vector.shape_cast %15 : vector<32xf32> to vector<32x1xf32>
    %17 = arith.mulf %5, %1 : vector<32x128xf32>
    %cst_7 = arith.constant dense<0.000000e+00> : vector<32xf32>
    %18 = vector.multi_reduction <add>, %17, %cst_7 [1] : vector<32x128xf32> to vector<32xf32>
    %19 = vector.shape_cast %18 : vector<32xf32> to vector<32x1xf32>
    %20 = arith.mulf %14, %16 : vector<32x1xf32>
    %21 = arith.subf %20, %19 : vector<32x1xf32>
    %22 = vector.shape_cast %21 : vector<32x1xf32> to vector<1x32x1xf32>
    %cst_8 = arith.constant dense<0.000000e+00> : vector<1xf32>
    %23 = vector.multi_reduction <add>, %22, %cst_8 [1, 2] : vector<1x32x1xf32> to vector<1xf32>
    %24 = vector.shape_cast %23 : vector<1xf32> to vector<1x1x1xf32>
    %25 = vector.extract %24[0, 0, 0] : f32 from vector<1x1x1xf32>
    %26 = vector.broadcast %25 : f32 to vector<1x8x128xf32>
    %c0_9 = arith.constant 0 : index
    %c0_10 = arith.constant 0 : index
    %c0_11 = arith.constant 0 : index
    %27 = vector.load %arg3[%c0_9, %c0_10, %c0_11] : memref<1x8x128xf32, #tpu.memory_space<vmem>>, vector<1x8x128xf32>
    tpu.vector_store %arg3[%c0_9, %c0_10, %c0_11], %26 {strides = array<i32>} : memref<1x8x128xf32, #tpu.memory_space<vmem>>, vector<1x8x128xf32>,
    return
  }
  func.func @transform_0(%arg0: i32) -> (i32, i32, i32) {
    %c0_i32 = arith.constant 0 : i32
    %c0_i32_0 = arith.constant 0 : i32
    %c0_i32_1 = arith.constant 0 : i32
    return %arg0, %c0_i32, %c0_i32_0 : i32, i32, i32
  }
  func.func @transform_1(%arg0: i32) -> (i32, i32, i32) {
    %c0_i32 = arith.constant 0 : i32
    %c0_i32_0 = arith.constant 0 : i32
    %c0_i32_1 = arith.constant 0 : i32
    return %arg0, %c0_i32, %c0_i32_0 : i32, i32, i32
  }
  func.func @transform_2(%arg0: i32) -> (i32, i32, i32) {
    %c0_i32 = arith.constant 0 : i32
    %c0_i32_0 = arith.constant 0 : i32
    %c0_i32_1 = arith.constant 0 : i32
    return %arg0, %c0_i32, %c0_i32_0 : i32, i32, i32
  }
}

</mosaic_0001>

<bundles_post_ra>
// kernel: tpu_custom_call.1
= control target key start
LH: loop header
LB: loop body
LE: loop exit
PB: predicated region body
PF: predicated region fallthrough
CT: control target
= control target key end

     0   :  { %7 = vsyncpa [#allocation3], 0  ;;  %s769_s0 = inlined_call_operand.vmem [shape: f32[8,32,128], index: 0, kind: input, shape index: {}]   ;;  %s770_s1 = inlined_call_operand.vmem [shape: f32[8,128,34], index: 1, kind: input, shape index: {}]   ;;  %s771_s2 = inlined_call_operand.hbm [shape: f32[8,8,128], index: 2, kind: output, shape index: {}]  }
   0x1   :  { %9 = vsyncpa [#allocation3 + $0x1], 0  ;;  %s604_s9 = smov 0   ;;  %s606_s10 = smov 0  }
   0x2   :  { %s608_s11 = smov 0   ;;  %s610_s12 = smov 0  }
   0x3 LB: > { %s625_s13 = sadd.s32 4294967295, %s585_s12   ;;  %s450_s14 = sadd.s32 4294967294, %s585_s12   ;;  %s585_s12 = sphi %s610_s12, %s777_s12   ;;  %s581_s11 = sphi %s608_s11, %s776_s11   ;;  %s577_s10 = sphi %s606_s10, %s775_s10   ;;  %s573_s9 = sphi %s604_s9, %s774_s9  }
   0x4   : > { %s629_s15 = sadd.s32 1, %s585_s12   ;;  %s74_s16 = sadd.s32 1, %s581_s11 }
   0x5   : > { %s71_s17 = ssub.s32 %s585_s12, %s629_s15  ;;  %p84_p0 = scmp.ne.s32.totalorder %s581_s11, %s577_s10 }
   0x6   : > { %p72_p1 = scmp.eq.s32.totalorder %s71_s17, 0  ;;  %p85_p2 = scmp.eq.s32.totalorder %s625_s13, 7 }
   0x7   : > { %p90_p3 = scmp.ne.s32.totalorder %s577_s10, %s573_s9  ;;  %p91_p4 = scmp.eq.s32.totalorder %s450_s14, 7 }
   0x8   : > { %s640_s18 = scalar_select %p72_p1, %s581_s11, %s74_s16  }
   0x9   : > { %p642_p5 = por %p85_p2, %p84_p0  ;;  %p646_p6 = por %p91_p4, %p90_p3 }
   0xa   : > { %p453_p7 = scmp.ge.s32.totalorder %s585_s12, 1  ;;  %p125_p8 = scmp.lt.s32.totalorder %s585_s12, 9 }
   0xc   : > { %p126_p9 = pnand %p453_p7, %p125_p8 }
   0xd   : > { %p152_p10 = scmp.lt.s32.totalorder (!%p126_p9), %s625_s13, 7  ;;  %s587_s26 = smov (!%p126_p9), 126   ;;  %vm346_vm0 = vcmask (!%p126_p9), 7168  }
   0xe   : > { %129 = sbr.rel (%p126_p9) target bundleno = 703 (0x2bf), region = 28  ;;  %s149_s3 = sand.u32 (!%p126_p9), 1, %s577_s10  }
   0xf   : > { %s454_s4 = sshll.u32 (!%p126_p9), %s149_s3, 3  ;;  %s460_s7 = sshll.u32 (!%p126_p9), %s625_s13, 7 }
  0x10   : > { %s151_s5 = scalar_lea.vmem (!%p126_p9), [#allocation2], %s454_s4  ;;  %s729_s17 = scalar_lea.hbm (!%p126_p9), %s771_s2, %s460_s7 }
  0x11   : > { %s379_s6 = sshll.u32 (!%p126_p9), %s151_s5, 4  ;;  %s724_s6 = int_to_ptr.vmem [resolvable:$true] %s379_s6 }
  0x15   : > { %s654_s21 = scalar_select %p152_p10, %s625_s13, 7 }
  0x16   : > { %s588_s13 = smov [#allocation2]  }
  0x17   : > { %s464_s22 = sshll.u32 %s654_s21, 7  ;;  %s463_s27 = sshll.u32 %s654_s21, 5 }
  0x18   : > { %s660_s25 = scalar_lea.vmem %s770_s1, %s464_s22  ;;  %s156_s30 = scalar_lea.vmem %s769_s0, %s463_s27 }
  0x19   : > { %v168_v0 = vld [vmem:[%s660_s25 + $0x10] sm:$0xff]  ;;  %v166_v1 = vld [vmem:[%s660_s25] sm:$0xff]  ;;  %v169_v2 = vld [vmem:[%s660_s25 + $0x18] sm:$0xff]  ;;  %s366_s21 = scalar_lea.sflag [#allocation3], %s149_s3  ;;  %s523_s22 = scalar_lea.vmem %s724_s6, 128 }
  0x1a   : > { %202 = vrot.lane.b32.xlu1 %v168_v0, %s587_s26  ;;  %198 = vrot.lane.b32.xlu0 %v166_v1, %s587_s26  ;;  %v167_v3 = vld [vmem:[%s660_s25 + $0x8] sm:$0xff]  ;;  %v170_v5 = vld [vmem:[%s660_s25 + $0x20] sm:$0xff]  ;;  %p524_p11 = scmp.ne.s32.totalorder %s724_s6, %s523_s22  ;;  %s527_s23 = sshll.u32 %s588_s13, 4  ;;  %s528_s23 = int_to_ptr.vmem [resolvable:$false] %s527_s23 }
  0x1b   : > { %v171_v4 = vld [vmem:[%s660_s25 + $0x28] sm:$0xff]  ;;  %v173_v6 = vld [vmem:[%s660_s25 + $0x38] sm:$0xff]  ;;  %v172_v7 = vld [vmem:[%s660_s25 + $0x30] sm:$0xff]  ;;  %s529_s24 = scalar_lea.vmem %s528_s23, 256  ;;  %p530_p0 = scmp.lt.s32.totalorder %s724_s6, %s528_s23 }
  0x1c   : > { %v175_v8 = vld [vmem:[%s660_s25 + $0x48] sm:$0xff]  ;;  %v174_v9 = vld [vmem:[%s660_s25 + $0x40] sm:$0xff]  ;;  %v177_v10 = vld [vmem:[%s660_s25 + $0x58] sm:$0xff]  ;;  %p525_p12 = pnand %p524_p11, %p642_p5  ;;  %p531_p1 = scmp.lt.s32.totalorder %s529_s24, %s523_s22 }
  0x1d   : > { %v176_v11 = vld [vmem:[%s660_s25 + $0x50] sm:$0xff]  ;;  %v690_v12 = vld [vmem:[%s156_s30] sm:$0xff]  ;;  %v693_v13 = vld [vmem:[%s156_s30 + $0x8] sm:$0xff] }
  0x1e   : > { %204 = vrot.lane.b32.xlu1 %v169_v2, %s587_s26  ;;  %200 = vrot.lane.b32.xlu0 %v167_v3, %s587_s26  ;;  %v696_v14 = vld [vmem:[%s156_s30 + $0x10] sm:$0xff]  ;;  %v178_v15 = vld [vmem:[%s660_s25 + $0x60] sm:$0xff]  ;;  %p526_p13 = pneg %p525_p12  ;;  %p532_p2 = por %p531_p1, %p530_p0 }
  0x1f   : > { %v179_v16 = vld [vmem:[%s660_s25 + $0x68] sm:$0xff]  ;;  %v180_v17 = vld [vmem:[%s660_s25 + $0x70] sm:$0xff]  ;;  %v181_v18 = vld [vmem:[%s660_s25 + $0x78] sm:$0xff] }
  0x20   : > { %v707_v19 = vld [vmem:[%s156_s30 + $0x18] sm:$0xff]  ;;  %p533_p3 = pnand %p532_p2, %p526_p13 }
  0x22   : > { %208 = vrot.lane.b32.xlu1 %v171_v4, %s587_s26  ;;  %206 = vrot.lane.b32.xlu0 %v170_v5, %s587_s26 }
  0x26   : > { %212 = vrot.lane.b32.xlu1 %v173_v6, %s587_s26  ;;  %210 = vrot.lane.b32.xlu0 %v172_v7, %s587_s26 }
  0x2a   : > { %216 = vrot.lane.b32.xlu1 %v175_v8, %s587_s26  ;;  %214 = vrot.lane.b32.xlu0 %v174_v9, %s587_s26 }
  0x2e   : > { %220 = vrot.lane.b32.xlu1 %v177_v10, %s587_s26  ;;  %218 = vrot.lane.b32.xlu0 %v176_v11, %s587_s26 }
  0x4d   : > { %278 = vmax.xlane.f32.xlu0 %v690_v12 }
  0x52   : > { %280 = vmax.xlane.f32.xlu1 %v693_v13 }
  0x56   : > { %282 = vmax.xlane.f32.xlu1 %v696_v14 }
  0x63   : > { %222 = vrot.lane.b32.xlu0 %v178_v15, %s587_s26 }
  0x67   : > { %224 = vrot.lane.b32.xlu1 %v179_v16, %s587_s26 }
  0x6b   : > { %226 = vrot.lane.b32.xlu1 %v180_v17, %s587_s26 }
  0x6f   : > { %228 = vrot.lane.b32.xlu1 %v181_v18, %s587_s26 }
  0x82   : > { %284 = vmax.xlane.f32.xlu0 %v707_v19 }
  0x8c   : > { %v199_v20 = vpop.permute.xlu0 %198  ;;  %v203_v22 = vpop.permute.xlu1 %202 }
  0x90   : > { %v201_v21 = vpop.permute.xlu0 %200  ;;  %v205_v23 = vpop.permute.xlu1 %204 }
  0x94   : > { %v207_v24 = vpop.permute.xlu0 %206  ;;  %v209_v25 = vpop.permute.xlu1 %208 }
  0x98   : > { %246 = vxpose.xlu1.b32.start [1/16] (narrow) %v199_v20, 32  ;;  %v211_v26 = vpop.permute.xlu0 %210  ;;  %v213_v27 = vpop.permute.xlu1 %212 }
  0x9c   : > { %247 = vxpose.xlu1.b32.cont [2/16] (narrow) %v201_v21, 32  ;;  %v215_v28 = vpop.permute.xlu0 %214  ;;  %v217_v29 = vpop.permute.xlu1 %216 }
  0xa0   : > { %248 = vxpose.xlu1.b32.cont [3/16] (narrow) %v203_v22, 32  ;;  %v219_v30 = vpop.permute.xlu0 %218  ;;  %v221_v31 = vpop.permute.xlu1 %220 }
  0xa4   : > { %249 = vxpose.xlu1.b32.cont [4/16] (narrow) %v205_v23, 32 }
  0xa8   : > { %250 = vxpose.xlu1.b32.cont [5/16] (narrow) %v207_v24, 32 }
  0xac   : > { %251 = vxpose.xlu1.b32.cont [6/16] (narrow) %v209_v25, 32 }
  0xb0   : > { %252 = vxpose.xlu1.b32.cont [7/16] (narrow) %v211_v26, 32 }
  0xb4   : > { %253 = vxpose.xlu1.b32.cont [8/16] (narrow) %v213_v27, 32 }
  0xb8   : > { %254 = vxpose.xlu1.b32.cont [9/16] (narrow) %v215_v28, 32 }
  0xbc   : > { %255 = vxpose.xlu1.b32.cont [10/16] (narrow) %v217_v29, 32 }
  0xc0   : > { %256 = vxpose.xlu1.b32.cont [11/16] (narrow) %v219_v30, 32 }
  0xc4   : > { %257 = vxpose.xlu1.b32.cont [12/16] (narrow) %v221_v31, 32 }
  0xda   : > { %v710_v32 = vpop.xlane.xlu0 %278 }
  0xdb   : > { %v286_v33 = vsub.f32 %v690_v12, %v710_v32 }
  0xdd   : > { %v290_v34 = vmul.f32 1.442695, %v286_v33 }
  0xde   : > { %v223_v35 = vpop.permute.xlu0 %222 }
  0xdf   : > { %507 = vpow2.f32 %v290_v34  ;;  %v281_v36 = vpop.xlane.xlu1 %280  ;;  %258 = vxpose.xlu1.b32.cont [13/16] (narrow) %v223_v35, 32 }
  0xe0   : > { %v287_v37 = vsub.f32 %v693_v13, %v281_v36 }
  0xe2   : > { %v292_v38 = vmul.f32 1.442695, %v287_v37 }
  0xe3   : > { %v283_v39 = vpop.xlane.xlu1 %282 }
  0xe4   : > { %509 = vpow2.f32 %v292_v38  ;;  %v288_v40 = vsub.f32 %v696_v14, %v283_v39 }
  0xe6   : > { %v294_v41 = vmul.f32 1.442695, %v288_v40 }
  0xe7   : > { %v225_v42 = vpop.permute.xlu1 %224 }
  0xe8   : > { %511 = vpow2.f32 %v294_v41  ;;  %259 = vxpose.xlu1.b32.cont [14/16] (narrow) %v225_v42, 32 }
  0xe9   : > { %v508_v43 = vpop.eup %507 }
  0xea   : > { %298 = vadd.xlane.f32.xlu0 %v508_v43 }
  0xeb   : > { %v227_v44 = vpop.permute.xlu1 %226 }
  0xec   : > { %260 = vxpose.xlu1.b32.cont [15/16] (narrow) %v227_v44, 32 }
  0xee   : > { %v510_v45 = vpop.eup %509 }
  0xef   : > { %v229_v46 = vpop.permute.xlu1 %228  ;;  %300 = vadd.xlane.f32.xlu0 %v510_v45 }
  0xf0   : > { %261 = vxpose.xlu1.b32.end [16/16] (narrow) %v229_v46, 32 }
  0xf2   : > { %v512_v47 = vpop.eup %511 }
  0xf3   : > { %302 = vadd.xlane.f32.xlu0 %v512_v47 }
 0x10f   : > { %v285_v48 = vpop.xlane.xlu0 %284 }
 0x110   : > { %v289_v49 = vsub.f32 %v707_v19, %v285_v48 }
 0x112   : > { %v296_v50 = vmul.f32 1.442695, %v289_v49 }
 0x114   : > { %513 = vpow2.f32 %v296_v50 }
 0x11e   : > { %v514_v51 = vpop.eup %513 }
 0x11f   : > { %304 = vadd.xlane.f32.xlu0 %v514_v51 }
 0x134   : > { %v262_v52 = vpop.trf.xlu1 }
 0x135   : > { %318 = vadd.xlane.f32.xlu0 %v262_v52  ;;  %v326_v53 = vmul.f32 %v262_v52, %v690_v12 }
 0x138   : > { %v263_v54 = vpop.trf.xlu1 }
 0x139   : > { %330 = vadd.xlane.f32.xlu0 %v326_v53  ;;  %v327_v55 = vmul.f32 %v263_v54, %v693_v13 }
 0x13c   : > { %v264_v56 = vpop.trf.xlu1 }
 0x13d   : > { %320 = vadd.xlane.f32.xlu0 %v263_v54  ;;  %v328_v57 = vmul.f32 %v264_v56, %v696_v14 }
 0x140   : > { %v265_v58 = vpop.trf.xlu1 }
 0x141   : > { %332 = vadd.xlane.f32.xlu0 %v327_v55  ;;  %v329_v59 = vmul.f32 %v265_v58, %v707_v19 }
 0x145   : > { %322 = vadd.xlane.f32.xlu0 %v264_v56 }
 0x149   : > { %334 = vadd.xlane.f32.xlu0 %v328_v57 }
 0x14d   : > { %324 = vadd.xlane.f32.xlu0 %v265_v58 }
 0x151   : > { %336 = vadd.xlane.f32.xlu0 %v329_v59 }
 0x177   : > { %v299_v60 = vpop.xlane.xlu0 %298 }
 0x17c   : > { %v301_v61 = vpop.xlane.xlu0 %300 }
 0x17d   : > { %515 = vlog2.f32 %v301_v61 }
 0x17e   : > { %517 = vlog2.f32 %v299_v60 }
 0x180   : > { %v303_v62 = vpop.xlane.xlu0 %302 }
 0x181   : > { %519 = vlog2.f32 %v303_v62 }
 0x187   : > { %v516_v3 = vpop.eup %515 }
 0x188   : > { %v518_v4 = vpop.eup %517  ;;  %v309_v7 = vmul.f32 0.6931472, %v516_v3 }
 0x189   : > { %v307_v8 = vmul.f32 0.6931472, %v518_v4 }
 0x18a   : > { %v315_v11 = vadd.f32 %v309_v7, %v281_v36 }
 0x18b   : > { %v520_v5 = vpop.eup %519  ;;  %v314_v13 = vadd.f32 %v307_v8, %v710_v32 }
 0x18c   : > { %v311_v9 = vmul.f32 0.6931472, %v520_v5 }
 0x18e   : > { %v316_v15 = vadd.f32 %v311_v9, %v283_v39 }
 0x1ac   : > { %v305_v63 = vpop.xlane.xlu0 %304 }
 0x1ad   : > { %521 = vlog2.f32 %v305_v63 }
 0x1b7   : > { %v522_v12 = vpop.eup %521 }
 0x1b8   : > { %v313_v17 = vmul.f32 0.6931472, %v522_v12 }
 0x1ba   : > { %v317_v25 = vadd.f32 %v313_v17, %v285_v48 }
 0x1c2   : > { %v319_v0 = vpop.xlane.xlu0 %318 }
 0x1c3   : > { %v338_v18 = vmul.f32 %v319_v0, %v314_v13 }
 0x1c6   : > { %v331_v1 = vpop.xlane.xlu0 %330 }
 0x1c7   : > { %v342_v21 = vsub.f32 %v338_v18, %v331_v1 }
 0x1c9   : > { %v347_v26 = vsel %vm346_vm0, %v342_v21, 0.0 }
 0x1ca   : > { %v321_v2 = vpop.xlane.xlu0 %320 }
 0x1cb   : > { %v339_v14 = vmul.f32 %v321_v2, %v315_v11 }
 0x1ce   : > { %v333_v6 = vpop.xlane.xlu0 %332 }
 0x1cf   : > { %v343_v19 = vsub.f32 %v339_v14, %v333_v6 }
 0x1d1   : > { %v348_v24 = vsel %vm346_vm0, %v343_v19, 0.0 }
 0x1d2   : > { %v323_v10 = vpop.xlane.xlu0 %322  ;;  %v349_v29 = vadd.f32 %v348_v24, %v347_v26 }
 0x1d3   : > { %v340_v20 = vmul.f32 %v323_v10, %v316_v15 }
 0x1d6   : > { %v335_v16 = vpop.xlane.xlu0 %334 }
 0x1d7   : > { %v344_v22 = vsub.f32 %v340_v20, %v335_v16 }
 0x1d9   : > { %v350_v27 = vsel %vm346_vm0, %v344_v22, 0.0 }
 0x1da   : > { %v325_v23 = vpop.xlane.xlu0 %324  ;;  %v351_v32 = vadd.f32 %v350_v27, %v349_v29 }
 0x1db   : > { %v341_v28 = vmul.f32 %v325_v23, %v317_v25 }
 0x1de   : > { %v337_v30 = vpop.xlane.xlu0 %336 }
 0x1df   : > { %v345_v31 = vsub.f32 %v341_v28, %v337_v30 }
 0x1e1   : > { %v352_v33 = vsel %vm346_vm0, %v345_v31, 0.0 }
 0x1e2   : > { %v353_v34 = vadd.f32 %v352_v33, %v351_v32 }
 0x1e4   : > { %354 = vadd.xlane.f32.xlu0 %v353_v34 }
 0x271   : > { %v355_v35 = vpop.xlane.xlu0 %354 }
 0x272   : > { %v356_v36 = vrot.slane %v355_v35, 4 }
 0x274   : > { %v357_v37 = vadd.f32 %v356_v36, %v355_v35 }
 0x276   : > { %v358_v38 = vrot.slane %v357_v37, 2 }
 0x278   : > { %v359_v39 = vadd.f32 %v358_v38, %v357_v37 }
 0x27a   : > { %v360_v40 = vrot.slane %v359_v39, 1 }
 0x27c   : > { %v361_v41 = vadd.f32 %v360_v40, %v359_v39 }
 0x27e   : > { %465 = vpush %v361_v41 }
 0x2af   : > { %s466_s8 = spop %465 }
 0x2b0   : > { %v363_v42 = vstv %s466_s8 }
 0x2b1   : > { %364 = vst [vmem:[%s151_s5] sm:$0xff] %v363_v42 }
 0x2b2   : > { %536 = shalt.err (!%p533_p3)
}
 0x2b3   : > { %s537_s25 = scalar_lea.hbm %s729_s17, 128  ;;  %s541_s28 = scalar_lea.hbm %s771_s2, 1024 }
 0x2b4   : > { %p538_p4 = scmp.ne.s32.totalorder %s729_s17, %s537_s25  ;;  %p542_p9 = scmp.lt.u32.totalorder %s729_s17, %s771_s2 }
 0x2b5   : > { %p543_p10 = scmp.lt.u32.totalorder %s541_s28, %s537_s25  ;;  %p545_p12 = scmp.lt.u32.totalorder %s537_s25, %s729_s17 }
 0x2b6   : > { %p539_p7 = pnand %p538_p4, %p642_p5 }
 0x2b7   : > { %p544_p11 = por %p543_p10, %p542_p9 }
 0x2b8   : > { %p540_p8 = pneg %p539_p7 }
 0x2b9   : > { %p546_p13 = por %p545_p12, %p544_p11 }
 0x2bb   : > { %p547_p0 = pnand %p546_p13, %p540_p8 }
 0x2bd   : > { %550 = shalt.err (!%p547_p0)
}
 0x2be   : > { %467 = dma.vmem_to_hbm [thread:$0]  (%p642_p5), %s724_s6, 128, %s729_s17, %s366_s21  }
 0x2bf PF: > { %p473_p1 = scmp.ge.s32.totalorder %s585_s12, 2  ;;  %s391_s3 = sand.u32 1, %s573_s9  }
 0x2c0   : > { %s392_s4 = scalar_lea.sflag [#allocation3], %s391_s3 }
 0x2c1   : > { %p470_p2 = pnand %p473_p1, %p646_p6 }
 0x2c3   : > { %568 = dma.done.wait (!%p470_p2), %s392_s4, 128  }
 0x2c4   : > { %570 = vsyncadd (!%p470_p2), %s392_s4, 4294967168  ;;  %p12_p3 = scmp.ge.s32.totalorder %s629_s15, 10   ;;  %s774_s9 = smov %s577_s10 }
 0x2c5   : > { %s775_s10 = smov %s581_s11  ;;  %s776_s11 = smov %s640_s18 }
 0x2c6   : > { %s777_s12 = smov %s629_s15  ;;  %14 = sbr.rel (!%p12_p3) target bundleno = 3 (0x3), region = 66 }
 0x2cd   :  { %397 = vsyncpa [#allocation3], 1 }
 0x2ce   :  { %399 = vsyncpa [#allocation3 + $0x1], 1 }

</bundles_post_ra>
